<compile_context>
chip_gen: v7x
topology: tpu7x:2x2x1
jax: 0.10.0
libtpu: 0.0.40
codegen_flags: <defaults>
</compile_context>

<pallas_src>
import functools

import jax
import jax.numpy as jnp
from jax.experimental import pallas as pl
from jax.experimental.pallas import tpu as pltpu


def _ceil_to(x, d):
    return -(-x // d) * d


def _vmem_capacity_bytes():
    try:
        return int(pltpu.get_tpu_info().vmem_capacity_bytes)
    except Exception:
        return 64 << 20  # conservative default: v7x per-TC VMEM


def _step_bytes(tc, H, W, Hp, Wp, itemsize, with_scratch):
    io = tc * H * W * itemsize                 # one (1, TC, H, W) block
    scratch = tc * Hp * Wp * itemsize if with_scratch else 0
    return 2 * io + 2 * io + scratch           # dbl-buffered in + out + scratch


def _choose_channel_tile(C, H, W, Hp, Wp, itemsize, budget, with_scratch):
    """Largest channel tile TC (divisor of C) whose pipelined footprint fits."""
    best = 1
    for tc in range(1, C + 1):
        if C % tc == 0 and _step_bytes(tc, H, W, Hp, Wp, itemsize,
                                       with_scratch) <= budget:
            best = tc
    return best


# ---------------------------------------------------------------------------
# Fused pad -> inner net -> crop: a single pallas_call, one HBM round trip.
# ---------------------------------------------------------------------------
def _fused_pad_net_crop_kernel(x_ref, o_ref, pbuf, *, net_fn):
    """x_ref/o_ref: (1, TC, H, W) block; pbuf: (1, TC, Hp, Wp) VMEM scratch."""
    _, C, H, W = x_ref.shape
    _, _, Hp, Wp = pbuf.shape
    # Build the zero-padded block in VMEM scratch, each element written once:
    # valid region + bottom strip + right strip (no full-plane zero-fill).
    pbuf[:, :, :H, :W] = x_ref[...]
    if Hp > H:
        pbuf[:, :, H:, :] = jnp.zeros((1, C, Hp - H, Wp), pbuf.dtype)
    if Wp > W:
        pbuf[:, :, :H, W:] = jnp.zeros((1, C, H, Wp - W), pbuf.dtype)
    # Inner net on the padded block (must be jnp-traceable block-wise).
    y = net_fn(pbuf[...])
    # Crop + single cast directly into the output block (no padded writeback).
    o_ref[...] = y[:, :, :H, :W].astype(o_ref.dtype)


def _net_only_kernel(x_ref, o_ref, *, net_fn):
    """Fast path when H, W are already multiples of the divisor: no scratch."""
    o_ref[...] = net_fn(x_ref[...]).astype(o_ref.dtype)


def fused_pad_net_unpad(x, divisor, net_fn, *, channel_tile=None):
    """pad-to-divisor -> net_fn -> crop, fused into one Pallas kernel."""
    N, C, H, W = x.shape
    Hp, Wp = _ceil_to(H, divisor), _ceil_to(W, divisor)
    needs_pad = (Hp != H) or (Wp != W)
    itemsize = jnp.dtype(x.dtype).itemsize

    capacity = _vmem_capacity_bytes()
    budget = capacity // 2  # headroom for compiler-internal scratch
    if channel_tile is None:
        tc = _choose_channel_tile(C, H, W, Hp, Wp, itemsize, budget, needs_pad)
    else:
        tc = channel_tile
        assert C % tc == 0, "channel_tile must divide C"
    step = _step_bytes(tc, H, W, Hp, Wp, itemsize, needs_pad)
    vmem_limit = int(min(capacity, max(step + (4 << 20), 32 << 20)))

    grid = (N, C // tc)
    in_spec = pl.BlockSpec((1, tc, H, W), lambda n, c: (n, c, 0, 0))
    out_spec = pl.BlockSpec((1, tc, H, W), lambda n, c: (n, c, 0, 0))

    if needs_pad:
        kernel = functools.partial(_fused_pad_net_crop_kernel, net_fn=net_fn)
        scratch = [pltpu.VMEM((1, tc, Hp, Wp), x.dtype)]
    else:
        kernel = functools.partial(_net_only_kernel, net_fn=net_fn)
        scratch = []

    return pl.pallas_call(
        kernel,
        out_shape=jax.ShapeDtypeStruct((N, C, H, W), x.dtype),
        grid=grid,
        in_specs=[in_spec],
        out_specs=out_spec,
        scratch_shapes=scratch,
        compiler_params=pltpu.CompilerParams(
            dimension_semantics=("parallel", "parallel"),
            vmem_limit_bytes=vmem_limit),
    )(x)


# ---------------------------------------------------------------------------
# Standalone pad / unpad for a non block-traceable inner net: pure data
# movement, so use plain XLA ops (near-roofline strided DMAs, no extra
# HBM->VMEM->HBM stage) per the performance review.
# ---------------------------------------------------------------------------
def pad_to_divisor(x, divisor):
    N, C, H, W = x.shape
    Hp, Wp = _ceil_to(H, divisor), _ceil_to(W, divisor)
    if Hp == H and Wp == W:
        return x
    return jnp.pad(x, ((0, 0), (0, 0), (0, Hp - H), (0, Wp - W)))


def unpad_from(x, H, W):
    Hp, Wp = x.shape[-2:]
    if Hp == H and Wp == W:
        return x
    return x[:, :, :H, :W]


# ---------------------------------------------------------------------------
# Module mirrors
# ---------------------------------------------------------------------------
class PadUnpad:
    """Pads NCHW input so H, W are multiples of `divisor`, runs the inner net,
    then crops the result back to the original spatial size."""

    def __init__(self, net, divisor, fuse_blockwise_net=True):
        self.net = net
        self.divisor = divisor
        self.fuse_blockwise_net = fuse_blockwise_net

    def forward(self, ipt):
        if self.net is None:
            # SubNetwork leaves the inner net undefined: pad followed by crop
            # is exactly the identity, so skip all kernels / HBM traffic.
            return ipt
        if self.fuse_blockwise_net:
            # One pallas_call: pad -> net -> crop (single HBM round trip).
            return fused_pad_net_unpad(ipt, self.divisor, self.net)
        # TODO(synk): a non block-traceable inner net (e.g. a full conv stack)
        # runs as its own jitted computation between XLA pad / crop ops.
        N, C, H, W = ipt.shape
        padded = pad_to_divisor(ipt, self.divisor)
        processed = self.net(padded)
        return unpad_from(processed, H, W)


class SubNetwork:
    """JAX/Pallas mirror of the PyTorch SubNetwork: forward == pad_unpad.forward."""

    def __init__(self, args=None, device=None, divisor=8):
        self.args = args
        self.device = device
        self.net = None  # no inner network / parameters are defined in the spec
        self.pad_unpad = PadUnpad(net=self.net, divisor=divisor)

    @property
    def divisor(self):
        return self.pad_unpad.divisor

    def forward(self, ipt):
        return self.pad_unpad.forward(ipt)


if __name__ == "__main__":
    key = jax.random.PRNGKey(0)
    divisor = 8

    # Non-divisible spatial dims -> pad/crop path is non-trivial.
    x = jax.random.normal(key, (2, 4, 13, 19), dtype=jnp.float32)
    # Divisible spatial dims -> exercises the no-pad fast path (no scratch).
    x_aligned = jax.random.normal(jax.random.PRNGKey(1), (2, 4, 16, 16),
                                  dtype=jnp.float32)

    # Spec-faithful forward: net is None -> identity fast path (no kernels).
    model = SubNetwork(divisor=divisor)
    out = model.forward(x)

    # Exercise the fused Pallas kernel directly with simple block-wise nets.
    fused_scale = fused_pad_net_unpad(x, divisor, lambda t: 2.0 * t)
    fused_shift = fused_pad_net_unpad(x, divisor, lambda t: t + 1.0)
    fused_fast = fused_pad_net_unpad(x_aligned, divisor,
                                     lambda t: 0.5 * t + 1.0)

    # XLA pad / crop round trip (non-fused standalone path).
    padded = pad_to_divisor(x, divisor)       # (2, 4, 16, 24)
    cropped = unpad_from(padded, 13, 19)      # (2, 4, 13, 19)

    out, fused_scale, fused_shift, fused_fast, padded, cropped = (
        jax.block_until_ready(
            (out, fused_scale, fused_shift, fused_fast, padded, cropped)))

    # Pure-JAX references (pad -> net -> crop).
    def ref(xx, net):
        N, C, H, W = xx.shape
        Hp, Wp = _ceil_to(H, divisor), _ceil_to(W, divisor)
        p = jnp.pad(xx, ((0, 0), (0, 0), (0, Hp - H), (0, Wp - W)))
        return net(p)[:, :, :H, :W]

    assert out.shape == x.shape, (out.shape, x.shape)
    assert bool(jnp.allclose(out, x)), "forward (identity net) mismatch"

    assert padded.shape == (2, 4, 16, 24), padded.shape
    assert bool(jnp.allclose(padded[:, :, :13, :19], x)), "pad valid region"
    assert float(jnp.abs(padded[:, :, 13:, :]).max()) == 0.0, "bottom pad != 0"
    assert float(jnp.abs(padded[:, :, :13, 19:]).max()) == 0.0, "right pad != 0"
    assert bool(jnp.allclose(cropped, x)), "pad/unpad round-trip mismatch"

    assert bool(jnp.allclose(fused_scale, ref(x, lambda t: 2.0 * t))), \
        "fused pad->2x->crop mismatch"
    assert bool(jnp.allclose(fused_shift, ref(x, lambda t: t + 1.0))), \
        "fused pad->+1->crop mismatch"
    assert bool(jnp.allclose(fused_fast,
                             ref(x_aligned, lambda t: 0.5 * t + 1.0))), \
        "fused no-pad fast-path mismatch"

    print("KERNEL_OK")
</pallas_src>

<mosaic_0001>
module attributes {stable_mosaic.version = 11 : i64} {
  func.func @_fused_pad_net_crop_kernel(%arg0: i32, %arg1: i32, %arg2: memref<1x4x13x19xf32, #tpu.memory_space<vmem>>, %arg3: memref<1x4x13x19xf32, #tpu.memory_space<vmem>>, %arg4: memref<1x4x16x24xf32, #tpu.memory_space<vmem>>) attributes {dimension_semantics = [#tpu.dimension_semantics<parallel>, #tpu.dimension_semantics<parallel>], iteration_bounds = array<i64: 2, 1>, scalar_prefetch = 0 : i64, scratch_operands = 1 : i64, tpu.core_type = #tpu.core_type<tc>, window_params = [{transform_indices = @transform_0, window_bounds = array<i64: 1, 4, 13, 19>}, {transform_indices = @transform_1, window_bounds = array<i64: 1, 4, 13, 19>}]} {
    %c0 = arith.constant 0 : index
    %c0_0 = arith.constant 0 : index
    %c0_1 = arith.constant 0 : index
    %c0_2 = arith.constant 0 : index
    %0 = vector.load %arg2[%c0, %c0_0, %c0_1, %c0_2] : memref<1x4x13x19xf32, #tpu.memory_space<vmem>>, vector<1x4x13x19xf32>
    %c0_3 = arith.constant 0 : index
    %c0_4 = arith.constant 0 : index
    %c0_5 = arith.constant 0 : index
    %c0_6 = arith.constant 0 : index
    %1 = vector.load %arg4[%c0_3, %c0_4, %c0_5, %c0_6] : memref<1x4x16x24xf32, #tpu.memory_space<vmem>>, vector<1x4x13x19xf32>
    tpu.vector_store %arg4[%c0_3, %c0_4, %c0_5, %c0_6], %0 {strides = array<i32>} : memref<1x4x16x24xf32, #tpu.memory_space<vmem>>, vector<1x4x13x19xf32>,
    %cst = arith.constant 0.000000e+00 : f32
    %2 = vector.broadcast %cst : f32 to vector<1x4x3x24xf32>
    %c0_7 = arith.constant 0 : index
    %c0_8 = arith.constant 0 : index
    %c13 = arith.constant 13 : index
    %c0_9 = arith.constant 0 : index
    %3 = vector.load %arg4[%c0_7, %c0_8, %c13, %c0_9] : memref<1x4x16x24xf32, #tpu.memory_space<vmem>>, vector<1x4x3x24xf32>
    tpu.vector_store %arg4[%c0_7, %c0_8, %c13, %c0_9], %2 {strides = array<i32>} : memref<1x4x16x24xf32, #tpu.memory_space<vmem>>, vector<1x4x3x24xf32>,
    %cst_10 = arith.constant 0.000000e+00 : f32
    %4 = vector.broadcast %cst_10 : f32 to vector<1x4x13x5xf32>
    %c0_11 = arith.constant 0 : index
    %c0_12 = arith.constant 0 : index
    %c0_13 = arith.constant 0 : index
    %c19 = arith.constant 19 : index
    %5 = vector.load %arg4[%c0_11, %c0_12, %c0_13, %c19] : memref<1x4x16x24xf32, #tpu.memory_space<vmem>>, vector<1x4x13x5xf32>
    tpu.vector_store %arg4[%c0_11, %c0_12, %c0_13, %c19], %4 {strides = array<i32>} : memref<1x4x16x24xf32, #tpu.memory_space<vmem>>, vector<1x4x13x5xf32>,
    %c0_14 = arith.constant 0 : index
    %c0_15 = arith.constant 0 : index
    %c0_16 = arith.constant 0 : index
    %c0_17 = arith.constant 0 : index
    %6 = vector.load %arg4[%c0_14, %c0_15, %c0_16, %c0_17] : memref<1x4x16x24xf32, #tpu.memory_space<vmem>>, vector<1x4x16x24xf32>
    %cst_18 = arith.constant 2.000000e+00 : f32
    %7 = vector.broadcast %cst_18 : f32 to vector<1x4x16x24xf32>
    %8 = arith.mulf %7, %6 : vector<1x4x16x24xf32>
    %9 = vector.extract_strided_slice %8 {offsets = [0, 0, 0, 0], sizes = [1, 4, 13, 19], strides = [1, 1, 1, 1]} : vector<1x4x16x24xf32> to vector<1x4x13x19xf32>
    %c0_19 = arith.constant 0 : index
    %c0_20 = arith.constant 0 : index
    %c0_21 = arith.constant 0 : index
    %c0_22 = arith.constant 0 : index
    %10 = vector.load %arg3[%c0_19, %c0_20, %c0_21, %c0_22] : memref<1x4x13x19xf32, #tpu.memory_space<vmem>>, vector<1x4x13x19xf32>
    tpu.vector_store %arg3[%c0_19, %c0_20, %c0_21, %c0_22], %9 {strides = array<i32>} : memref<1x4x13x19xf32, #tpu.memory_space<vmem>>, vector<1x4x13x19xf32>,
    return
  }
  func.func @transform_0(%arg0: i32, %arg1: i32) -> (i32, i32, i32, i32) {
    %c0_i32 = arith.constant 0 : i32
    %c0_i32_0 = arith.constant 0 : i32
    %c0_i32_1 = arith.constant 0 : i32
    return %arg0, %arg1, %c0_i32, %c0_i32_0 : i32, i32, i32, i32
  }
  func.func @transform_1(%arg0: i32, %arg1: i32) -> (i32, i32, i32, i32) {
    %c0_i32 = arith.constant 0 : i32
    %c0_i32_0 = arith.constant 0 : i32
    %c0_i32_1 = arith.constant 0 : i32
    return %arg0, %arg1, %c0_i32, %c0_i32_0 : i32, i32, i32, i32
  }
}

</mosaic_0001>

<bundles_post_ra>
// kernel: tpu_custom_call.1
= control target key start
LH: loop header
LB: loop body
LE: loop exit
PB: predicated region body
PF: predicated region fallthrough
CT: control target
= control target key end

     0   :  { %s387_s6 = smov 0   ;;  %s389_s7 = smov 0   ;;  %s451_s0 = inlined_call_operand.vmem [shape: f32[2,4,13,19], index: 0, kind: input, shape index: {}]   ;;  %s452_s1 = inlined_call_operand.vmem [shape: f32[2,4,13,19], index: 1, kind: output, shape index: {}]  }
   0x1   :  { %s391_s8 = smov 0  }
   0x2 LB: > { %s23_s9 = sadd.s32 1, %s370_s7  ;;  %p318_p0 = scmp.ge.s32.totalorder %s374_s8, 1  ;;  %s374_s8 = sphi %s391_s8, %s11_s8   ;;  %s370_s7 = sphi %s389_s7, %s454_s7   ;;  %s366_s6 = sphi %s387_s6, %s453_s6  }
   0x3   : > { %p25_p1 = scmp.ge.s32.totalorder %s23_s9, 2  ;;  %p109_p2 = scmp.lt.s32.totalorder %s374_s8, 3 }
   0x5   : > { %s456_s9 = smov (%p25_p1, %s23_s9), 0  ;;  %p110_p3 = pnand %p318_p0, %p109_p2 }
   0x6   : > { %p140_p4 = scmp.lt.s32.totalorder (!%p110_p3), %s366_s6, 1  ;;  %vm179_vm0 = vcmask (!%p110_p3), 190464   ;;  %v376_v0 = vmov (!%p110_p3), 0.0   ;;  %vm169_vm1 = vcmask (!%p110_p3), 154624   ;;  %vm171_vm2 = vcmask (!%p110_p3), 151552  }
   0x7   : > { %113 = sbr.rel (%p110_p3) target bundleno = 37 (0x25), region = 24  ;;  %180 = vst.msk [vmem:[#allocation2 + $0xd] sm:$0x7] (!%p110_p3), %vm179_vm0, %v376_v0  ;;  %181 = vst.msk [vmem:[#allocation2 + $0x1d] sm:$0x7] (!%p110_p3), %vm179_vm0, %v376_v0  ;;  %vm184_vm3 = vcmask (!%p110_p3), 195736  }
   0x8   : > { %182 = vst.msk [vmem:[#allocation2 + $0x2d] sm:$0x7] (!%p110_p3), %vm179_vm0, %v376_v0  ;;  %183 = vst.msk [vmem:[#allocation2 + $0x3d] sm:$0x7] (!%p110_p3), %vm179_vm0, %v376_v0  ;;  %vm186_vm4 = vcmask (!%p110_p3), 192664  }
   0xe   : > { %s458_s6 = smov (!%p140_p4, %s366_s6), 1 }
   0xf   : > { %s325_s10 = sshll.u32 %s458_s6, 6 }
  0x10   : > { %s148_s13 = scalar_lea.vmem %s451_s0, %s325_s10  ;;  %s159_s16 = scalar_lea.vmem %s452_s1, %s325_s10 }
  0x11   : > { %v161_v1 = vld [vmem:[%s148_s13] sm:$0xff]  ;;  %v162_v2 = vld [vmem:[%s148_s13 + $0x8] sm:$0x1f]  ;;  %v163_v3 = vld [vmem:[%s148_s13 + $0x10] sm:$0xff] }
  0x12   : > { %170 = vst.msk [vmem:[#allocation2] sm:$0xff] %vm169_vm1, %v161_v1  ;;  %173 = vst.msk [vmem:[#allocation2 + $0x10] sm:$0xff] %vm169_vm1, %v163_v3  ;;  %v164_v4 = vld [vmem:[%s148_s13 + $0x18] sm:$0x1f]  ;;  %v165_v5 = vld [vmem:[%s148_s13 + $0x20] sm:$0xff] }
  0x13   : > { %172 = vst.msk [vmem:[#allocation2 + $0x8] sm:$0x1f] %vm171_vm2, %v162_v2  ;;  %v166_v6 = vld [vmem:[%s148_s13 + $0x28] sm:$0x1f]  ;;  %174 = vst.msk [vmem:[#allocation2 + $0x18] sm:$0x1f] %vm171_vm2, %v164_v4 }
  0x14   : > { %175 = vst.msk [vmem:[#allocation2 + $0x20] sm:$0xff] %vm169_vm1, %v165_v5  ;;  %v167_v7 = vld [vmem:[%s148_s13 + $0x30] sm:$0xff]  ;;  %v168_v8 = vld [vmem:[%s148_s13 + $0x38] sm:$0x1f] }
  0x15   : > { %176 = vst.msk [vmem:[#allocation2 + $0x28] sm:$0x1f] %vm171_vm2, %v166_v6  ;;  %178 = vst.msk [vmem:[#allocation2 + $0x38] sm:$0x1f] %vm171_vm2, %v168_v8 }
  0x16   : > { %185 = vst.msk [vmem:[#allocation2] sm:$0xff] %vm184_vm3, %v376_v0  ;;  %188 = vst.msk [vmem:[#allocation2 + $0x10] sm:$0xff] %vm184_vm3, %v376_v0 }
  0x17   : > { %187 = vst.msk [vmem:[#allocation2 + $0x8] sm:$0x1f] %vm186_vm4, %v376_v0  ;;  %189 = vst.msk [vmem:[#allocation2 + $0x18] sm:$0x1f] %vm186_vm4, %v376_v0 }
  0x18   : > { %177 = vst.msk [vmem:[#allocation2 + $0x30] sm:$0xff] %vm169_vm1, %v167_v7 }
  0x19   : > { %190 = vst.msk [vmem:[#allocation2 + $0x20] sm:$0xff] %vm184_vm3, %v376_v0  ;;  %192 = vst.msk [vmem:[#allocation2 + $0x30] sm:$0xff] %vm184_vm3, %v376_v0 }
  0x1a   : > { %191 = vst.msk [vmem:[#allocation2 + $0x28] sm:$0x1f] %vm186_vm4, %v376_v0  ;;  %193 = vst.msk [vmem:[#allocation2 + $0x38] sm:$0x1f] %vm186_vm4, %v376_v0 }
  0x1d   : > { %v194_v9 = vld [vmem:[#allocation2] sm:$0xff]  ;;  %v196_v11 = vld [vmem:[#allocation2 + $0x10] sm:$0xff] }
  0x1e   : > { %v195_v10 = vld [vmem:[#allocation2 + $0x8] sm:$0xff]  ;;  %v202_v12 = vmul.f32 2.0, %v194_v9  ;;  %v204_v14 = vmul.f32 2.0, %v196_v11  ;;  %v197_v15 = vld [vmem:[#allocation2 + $0x18] sm:$0xff] }
  0x1f   : > { %v203_v13 = vmul.f32 2.0, %v195_v10  ;;  %v205_v18 = vmul.f32 2.0, %v197_v15 }
  0x20   : > { %v198_v16 = vld [vmem:[#allocation2 + $0x20] sm:$0xff]  ;;  %v200_v21 = vld [vmem:[#allocation2 + $0x30] sm:$0xff]  ;;  %210 = vst.msk [vmem:[%s159_s16] sm:$0xff] %vm169_vm1, %v202_v12  ;;  %212 = vst.msk [vmem:[%s159_s16 + $0x10] sm:$0xff] %vm169_vm1, %v204_v14 }
  0x21   : > { %v199_v17 = vld [vmem:[#allocation2 + $0x28] sm:$0xff]  ;;  %v206_v19 = vmul.f32 2.0, %v198_v16  ;;  %v201_v22 = vld [vmem:[#allocation2 + $0x38] sm:$0xff]  ;;  %211 = vst.msk [vmem:[%s159_s16 + $0x8] sm:$0x1f] %vm171_vm2, %v203_v13  ;;  %v208_v23 = vmul.f32 2.0, %v200_v21 }
  0x22   : > { %v207_v20 = vmul.f32 2.0, %v199_v17  ;;  %v209_v24 = vmul.f32 2.0, %v201_v22  ;;  %213 = vst.msk [vmem:[%s159_s16 + $0x18] sm:$0x1f] %vm171_vm2, %v205_v18 }
  0x23   : > { %214 = vst.msk [vmem:[%s159_s16 + $0x20] sm:$0xff] %vm169_vm1, %v206_v19  ;;  %216 = vst.msk [vmem:[%s159_s16 + $0x30] sm:$0xff] %vm169_vm1, %v208_v23 }
  0x24   : > { %215 = vst.msk [vmem:[%s159_s16 + $0x28] sm:$0x1f] %vm171_vm2, %v207_v20  ;;  %217 = vst.msk [vmem:[%s159_s16 + $0x38] sm:$0x1f] %vm171_vm2, %v209_v24 }
  0x25 PF: > { %s11_s8 = sadd.s32 1, %s374_s8   ;;  %s453_s6 = smov %s370_s7 }
  0x26   : > { %p8_p5 = scmp.ge.s32.totalorder %s11_s8, 4   ;;  %s454_s7 = smov %s456_s9 }
  0x28   :  { %10 = sbr.rel (!%p8_p5) target bundleno = 2 (0x2), region = 54 }

</bundles_post_ra>
